<compile_context>
chip_gen: v7x
topology: tpu7x:2x2x1
jax: 0.10.0
libtpu: 0.0.40
codegen_flags: <defaults>
</compile_context>

<pallas_src>
import numpy as np
import jax
import jax.numpy as jnp
from jax.experimental import pallas as pl
from jax.experimental.pallas import tpu as pltpu

_LANE = 128  # TPU lane width; one table tile = 128 table rows


def make_relative_position_index(window_size):
    """Replicates the PyTorch __init__ buffer construction (static, numpy)."""
    wh, ww = window_size
    coords_h = np.arange(wh)
    coords_w = np.arange(ww)
    coords = np.stack(np.meshgrid(coords_h, coords_w, indexing="ij"))  # (2, Wh, Ww)
    coords_flatten = coords.reshape(2, -1)                              # (2, N)
    relative_coords = coords_flatten[:, :, None] - coords_flatten[:, None, :]
    relative_coords = relative_coords.transpose(1, 2, 0).copy()         # (N, N, 2)
    relative_coords[:, :, 0] += wh - 1
    relative_coords[:, :, 1] += ww - 1
    relative_coords[:, :, 0] *= 2 * ww - 1
    num_relative_distance = (2 * wh - 1) * (2 * ww - 1) + 3
    n_tok = wh * ww + 1
    rel_pos_index = np.zeros((n_tok, n_tok), dtype=np.int64)
    rel_pos_index[1:, 1:] = relative_coords.sum(-1)
    rel_pos_index[0, 0:] = num_relative_distance - 3
    rel_pos_index[0:, 0] = num_relative_distance - 2
    rel_pos_index[0, 0] = num_relative_distance - 1
    return rel_pos_index.astype(np.int32), num_relative_distance


def _rel_pos_bias_kernel(idx_ref, table_ref, out_ref):
    # idx_ref:   (1, bLL)          int32  -- lane-major flattened index slice
    # table_ref: (n_tiles*H, 128)  compute dtype, resident across grid steps;
    #            row t*H + h holds table[t*128 : (t+1)*128, h] (zero padded)
    # out_ref:   (H, bLL)          gathered bias, head-major, lane-dense
    num_heads = out_ref.shape[0]
    n_tiles = table_ref.shape[0] // num_heads
    bll = idx_ref.shape[1]

    idx = idx_ref[...]                                        # (1, bLL)
    lane_id = jnp.bitwise_and(idx, _LANE - 1)                 # idx % 128
    tile_id = jnp.right_shift(idx, _LANE.bit_length() - 1)    # idx // 128

    # 128-row one-hot of the within-tile lane index (0/1 exact in any dtype).
    rows = jax.lax.broadcasted_iota(jnp.int32, (_LANE, bll), 0)
    onehot = (lane_id == rows).astype(table_ref.dtype)        # (128, bLL)

    # Single MXU matmul: for every table tile t and head h,
    #   cand[t*H + h, j] = table[t*128 + lane_id_j, h]
    cand = jnp.dot(table_ref[...], onehot,
                   preferred_element_type=jnp.float32)        # (n_tiles*H, bLL)

    # Resolve the tile per output column with a cheap select chain (VPU).
    acc = jnp.zeros((num_heads, bll), jnp.float32)
    for t in range(n_tiles):
        acc = jnp.where(tile_id == t,
                        cand[t * num_heads:(t + 1) * num_heads, :], acc)
    out_ref[...] = acc.astype(out_ref.dtype)


def relative_position_bias_forward(table, rel_pos_index, window_size, *,
                                   block_ll=8192,
                                   compute_dtype=jnp.bfloat16,
                                   out_dtype=jnp.float32):
    """Pallas-backed forward.  Returns (num_heads, L, L) in out_dtype.

    compute_dtype=jnp.bfloat16 (default) rounds only the learned table to bf16
    for the MXU (the 0/1 one-hot stays exact); pass jnp.float32 for bit-exact
    parity with the PyTorch module.  out_dtype=jnp.bfloat16 halves the HBM
    writeback if the consuming attention runs in bf16.
    """
    wh, ww = window_size
    n_tok = wh * ww + 1
    ll = n_tok * n_tok
    d, num_heads = table.shape
    n_tiles = pl.cdiv(d, _LANE)
    d_pad = n_tiles * _LANE

    # Lane-multiple block over LL, clamped for tiny configs.  Per-block working
    # set ~ (128 onehot + n_tiles*H cand + H acc) * block_ll, i.e. a few MB at
    # 8192 even for BEiT-base -- safe for v7x's smaller VMEM and leaves >= 2
    # blocks for its two TensorCores at realistic sizes.
    block_ll = max(_LANE, (block_ll // _LANE) * _LANE)
    block_ll = min(block_ll, pl.cdiv(ll, _LANE) * _LANE)
    num_blocks = pl.cdiv(ll, block_ll)

    # Lane-major flattened index (1, LL).  The trailing partial block is read
    # with garbage padding, which is harmless (int ops only; the padded output
    # columns are masked on writeback).
    idx_flat = rel_pos_index.reshape(1, ll).astype(jnp.int32)

    # (D, H) -> (n_tiles*H, 128): row t*H + h = table[t*128:(t+1)*128, h].
    # Tiny static rearrangement, done once in the wrapper.
    table_pad = jnp.pad(table.astype(compute_dtype), ((0, d_pad - d), (0, 0)))
    table_tiled = (table_pad.reshape(n_tiles, _LANE, num_heads)
                   .transpose(0, 2, 1)
                   .reshape(n_tiles * num_heads, _LANE))

    gathered = pl.pallas_call(
        _rel_pos_bias_kernel,
        out_shape=jax.ShapeDtypeStruct((num_heads, ll), out_dtype),
        grid_spec=pltpu.PrefetchScalarGridSpec(
            num_scalar_prefetch=0,
            grid=(num_blocks,),
            in_specs=[
                pl.BlockSpec((1, block_ll), lambda i: (0, i)),                 # index slice
                pl.BlockSpec((n_tiles * num_heads, _LANE), lambda i: (0, 0)),  # table, resident
            ],
            out_specs=pl.BlockSpec((num_heads, block_ll), lambda i: (0, i)),
        ),
        compiler_params=pltpu.CompilerParams(
            dimension_semantics=("parallel",),       # 2x on v7x megacore
            vmem_limit_bytes=32 * 1024 * 1024),      # headroom for large block_ll
    )(idx_flat, table_tiled)

    # Free reshape: output is already unpadded, head-major and lane-dense.
    return gathered.reshape(num_heads, n_tok, n_tok)
    # TODO(synk): fuse this gather (or at least the bias add) into the attention
    # kernel that consumes it, eliminating the H*L*L HBM round trip entirely.


if __name__ == "__main__":
    window_size = (4, 4)
    num_heads = 8

    rel_pos_index_np, num_relative_distance = make_relative_position_index(window_size)
    rel_pos_index = jnp.asarray(rel_pos_index_np)

    # Deterministic parameter init (PyTorch uses zeros; small random values so
    # the gather is actually exercised).
    key = jax.random.PRNGKey(0)
    table = 0.02 * jax.random.normal(
        key, (num_relative_distance, num_heads), dtype=jnp.float32)

    n_tok = window_size[0] * window_size[1] + 1

    def reference(tbl):  # pure-JAX mirror of the PyTorch forward
        r = tbl[rel_pos_index.reshape(-1)].reshape(n_tok, n_tok, num_heads)
        return jnp.transpose(r, (2, 0, 1))

    # 1) Default bf16 compute path: exactly the bf16-rounded table, gathered.
    out_bf16 = relative_position_bias_forward(table, rel_pos_index, window_size)
    out_bf16 = jax.block_until_ready(out_bf16)
    assert out_bf16.shape == (num_heads, n_tok, n_tok), out_bf16.shape
    assert out_bf16.dtype == jnp.float32
    ref_bf16 = reference(table.astype(jnp.bfloat16).astype(jnp.float32))
    np.testing.assert_allclose(np.asarray(out_bf16), np.asarray(ref_bf16),
                               rtol=1e-6, atol=1e-6)

    # 2) f32 compute path: bit-exact parity with the module's f32 semantics.
    out_f32 = relative_position_bias_forward(
        table, rel_pos_index, window_size, compute_dtype=jnp.float32)
    out_f32 = jax.block_until_ready(out_f32)
    np.testing.assert_allclose(np.asarray(out_f32), np.asarray(reference(table)),
                               rtol=1e-6, atol=1e-6)

    print("KERNEL_OK")
</pallas_src>

<mosaic_0001>
module attributes {stable_mosaic.version = 11 : i64} {
  func.func @_rel_pos_bias_kernel(%arg0: i32, %arg1: memref<1x384xi32, #tpu.memory_space<vmem>>, %arg2: memref<8x128xbf16, #tpu.memory_space<vmem>>, %arg3: memref<8x384xf32, #tpu.memory_space<vmem>>) attributes {dimension_semantics = [#tpu.dimension_semantics<parallel>], iteration_bounds = array<i64: 1>, scalar_prefetch = 0 : i64, scratch_operands = 0 : i64, tpu.core_type = #tpu.core_type<tc>, window_params = [{transform_indices = @transform_0, window_bounds = array<i64: 1, 384>}, {pipeline_mode = #tpu.pipeline_mode<synchronous>, transform_indices = @transform_1, window_bounds = array<i64: 8, 128>}, {transform_indices = @transform_2, window_bounds = array<i64: 8, 384>}]} {
    %c0 = arith.constant 0 : index
    %c0_0 = arith.constant 0 : index
    %0 = vector.load %arg1[%c0, %c0_0] : memref<1x384xi32, #tpu.memory_space<vmem>>, vector<1x384xi32>
    %c127_i32 = arith.constant 127 : i32
    %1 = vector.broadcast %c127_i32 : i32 to vector<1x384xi32>
    %2 = arith.andi %0, %1 : vector<1x384xi32>
    %c7_i32 = arith.constant 7 : i32
    %3 = vector.broadcast %c7_i32 : i32 to vector<1x384xi32>
    %4 = arith.shrsi %0, %3 : vector<1x384xi32>
    %5 = tpu.iota {dimensions = array<i32: 0>} : vector<128x384xi32>
    %6 = vector.broadcast %2 : vector<1x384xi32> to vector<128x384xi32>
    %7 = arith.cmpi eq, %6, %5 : vector<128x384xi32>
    %8 = arith.extui %7 : vector<128x384xi1> to vector<128x384xi32>
    %9 = arith.sitofp %8 : vector<128x384xi32> to vector<128x384xf32>
    %10 = arith.truncf %9 : vector<128x384xf32> to vector<128x384xbf16>
    %c0_1 = arith.constant 0 : index
    %c0_2 = arith.constant 0 : index
    %11 = vector.load %arg2[%c0_1, %c0_2] : memref<8x128xbf16, #tpu.memory_space<vmem>>, vector<8x128xbf16>
    %cst = arith.constant dense<0.000000e+00> : vector<8x384xf32>
    %12 = tpu.matmul %11, %10, %cst {dimension_numbers = #tpu.dot_dimension_numbers<[1], [0], [0], [1], [0, 0, 1, 1], [], []>} : vector<8x128xbf16>, vector<128x384xbf16>, vector<8x384xf32> -> vector<8x384xf32>
    %cst_3 = arith.constant 0.000000e+00 : f32
    %13 = vector.broadcast %cst_3 : f32 to vector<8x384xf32>
    %c0_i32 = arith.constant 0 : i32
    %14 = vector.broadcast %c0_i32 : i32 to vector<1x384xi32>
    %15 = arith.cmpi eq, %4, %14 : vector<1x384xi32>
    %16 = vector.shape_cast %15 : vector<1x384xi1> to vector<1x384xi1>
    %17 = vector.broadcast %16 : vector<1x384xi1> to vector<8x384xi1>
    %18 = arith.select %17, %12, %13 : vector<8x384xi1>, vector<8x384xf32>
    %c0_4 = arith.constant 0 : index
    %c0_5 = arith.constant 0 : index
    %19 = vector.load %arg3[%c0_4, %c0_5] : memref<8x384xf32, #tpu.memory_space<vmem>>, vector<8x384xf32>
    tpu.vector_store %arg3[%c0_4, %c0_5], %18 {strides = array<i32>} : memref<8x384xf32, #tpu.memory_space<vmem>>, vector<8x384xf32>,
    return
  }
  func.func @transform_0(%arg0: i32) -> (i32, i32) {
    %c0_i32 = arith.constant 0 : i32
    %c0_i32_0 = arith.constant 0 : i32
    return %c0_i32, %arg0 : i32, i32
  }
  func.func @transform_1(%arg0: i32) -> (i32, i32) {
    %c0_i32 = arith.constant 0 : i32
    %c0_i32_0 = arith.constant 0 : i32
    %c0_i32_1 = arith.constant 0 : i32
    return %c0_i32, %c0_i32_0 : i32, i32
  }
  func.func @transform_2(%arg0: i32) -> (i32, i32) {
    %c0_i32 = arith.constant 0 : i32
    %c0_i32_0 = arith.constant 0 : i32
    return %c0_i32, %arg0 : i32, i32
  }
}

</mosaic_0001>

<bundles_post_ra>
// kernel: tpu_custom_call.1
= control target key start
LH: loop header
LB: loop body
LE: loop exit
PB: predicated region body
PF: predicated region fallthrough
CT: control target
= control target key end

     0   :  { %7 = vsyncpa [#allocation3], 0  ;;  %s749_s0 = inlined_call_operand.hbm [shape: s32[1,289], index: 0, kind: input, shape index: {}]   ;;  %s750_s1 = inlined_call_operand.hbm [shape: bf16[8,128], index: 1, kind: input, shape index: {}]   ;;  %s751_s2 = inlined_call_operand.hbm [shape: f32[8,289], index: 2, kind: output, shape index: {}]  }
   0x1   :  { %8 = vsyncpa [#allocation6], 0 }
   0x2   :  { %9 = vsyncpa [#allocation4], 0  ;;  %s562_s9 = smov [#allocation2]   ;;  %s563_s11 = smov [#allocation5]  }
   0x3   :  { %s16_s10 = sshll.u32 %s562_s9, 4  ;;  %s26_s12 = sshll.u32 %s563_s11, 4  ;;  %s17_s10 = int_to_ptr.vmem [resolvable:$true] %s16_s10  ;;  %s27_s12 = int_to_ptr.vmem [resolvable:$true] %s26_s12 }
   0x4   :  { %s490_s15 = scalar_lea.hbm %s749_s0, 48 }
   0x5   :  { %p491_p0 = scmp.ne.s32.totalorder %s749_s0, %s490_s15  ;;  %p494_p1 = scmp.lt.u32.totalorder %s490_s15, %s749_s0 }
   0x7   :  { %p496_p2 = pnand %p494_p1, %p491_p0 }
   0x9   :  { %499 = shalt.err (!%p496_p2)
}
   0xa   :  { %s500_s20 = scalar_lea.vmem %s17_s10, 48  ;;  %s504_s21 = scalar_lea.vmem %s17_s10, 64 }
   0xb   :  { %p501_p3 = scmp.ne.s32.totalorder %s17_s10, %s500_s20  ;;  %p505_p4 = scmp.lt.s32.totalorder %s17_s10, %s17_s10 }
   0xc   :  { %p506_p5 = scmp.lt.s32.totalorder %s504_s21, %s500_s20 }
   0xe   :  { %p507_p6 = por %p506_p5, %p505_p4 }
  0x10   :  { %p508_p7 = pnand %p507_p6, %p501_p3 }
  0x12   :  { %511 = shalt.err (!%p508_p7)
}
  0x13   :  { %19 = dma.hbm_to_vmem [thread:$0]  %s749_s0, 48, %s17_s10, [#allocation3]  }
  0x14   :  { %s512_s26 = scalar_lea.hbm %s750_s1, 64 }
  0x15   :  { %p513_p8 = scmp.ne.s32.totalorder %s750_s1, %s512_s26  ;;  %p516_p9 = scmp.lt.u32.totalorder %s512_s26, %s750_s1 }
  0x17   :  { %p518_p10 = pnand %p516_p9, %p513_p8 }
  0x19   :  { %521 = shalt.err (!%p518_p10)
}
  0x1a   :  { %s522_s3 = scalar_lea.vmem %s27_s12, 64  ;;  %p527_p12 = scmp.lt.s32.totalorder %s27_s12, %s27_s12 }
  0x1b   :  { %p523_p11 = scmp.ne.s32.totalorder %s27_s12, %s522_s3  ;;  %p528_p13 = scmp.lt.s32.totalorder %s522_s3, %s522_s3 }
  0x1d   :  { %p529_p0 = por %p528_p13, %p527_p12 }
  0x1f   :  { %p530_p1 = pnand %p529_p0, %p523_p11 }
  0x21   :  { %533 = shalt.err (!%p530_p1)
}
  0x22   :  { %29 = dma.hbm_to_vmem [thread:$0]  %s750_s1, 64, %s27_s12, [#allocation6]  }
  0x23   :  { %556 = dma.done.wait [#allocation3], 48  }
  0x24   :  { %557 = vsyncadd [#allocation3], 4294967248 }
  0x25   :  { %558 = dma.done.wait [#allocation6], 64  }
  0x26   :  { %559 = vsyncadd [#allocation6], 4294967232  ;;  %v40_v0 = vlaneseq  ;;  %v564_v1 = vmov 0.0   ;;  %vm565_vm0 = vmmov 0   ;;  %v566_v3 = vmov 0   ;;  %s568_s1 = smov [#allocation7]  }
  0x27   :  { %463 = vmatprep.subr.bf16.mxu1 %v564_v1  ;;  %479 = vmatprep.mubr.msk.bf16.mxu1 %vm565_vm0, %v564_v1  ;;  %v37_v7 = vld [vmem:[#allocation2] sm:$0x7]  ;;  %v567_v19 = vmov 1.0|1.0   ;;  %v237_v30 = vld [vmem:[#allocation5] sm:$0xf] }
  0x28   :  { %v610_v2 = vshrl.u32 %v40_v0, 7  ;;  %270 = vmatprep.mubr.bf16.mxu0 %v566_v3  ;;  %v38_v8 = vand.u32 127, %v37_v7  ;;  %v39_v10 = vshra.s32 %v37_v7, 7  ;;  %s348_s5 = sshll.u32 %s568_s1, 4  ;;  %s349_s5 = int_to_ptr.vmem [resolvable:$true] %s348_s5 }
  0x29   :  { %s534_s6 = scalar_lea.vmem %s349_s5, 384  ;;  %p539_p3 = scmp.lt.s32.totalorder %s349_s5, %s349_s5 }
  0x2a   :  { %v59_v4 = vsub.s32 0, %v610_v2  ;;  %v63_v5 = vsub.s32 1, %v610_v2  ;;  %v67_v6 = vsub.s32 2, %v610_v2  ;;  %v42_v9 = vadd.s32 8, %v610_v2  ;;  %p535_p2 = scmp.ne.s32.totalorder %s349_s5, %s534_s6  ;;  %p540_p4 = scmp.lt.s32.totalorder %s534_s6, %s534_s6 }
  0x2b   :  { %v43_v11 = vadd.s32 16, %v610_v2  ;;  %v44_v12 = vadd.s32 24, %v610_v2  ;;  %vm319_vm1 = vcmp.eq.s32.totalorder %v39_v10, 0  ;;  %v45_v16 = vadd.s32 32, %v610_v2 }
  0x2c   :  { %v620_v13 = vrot.slane %v38_v8, %v59_v4  ;;  %v624_v14 = vrot.slane %v38_v8, %v63_v5  ;;  %v628_v15 = vrot.slane %v38_v8, %v67_v6  ;;  %v46_v17 = vadd.s32 40, %v610_v2  ;;  %p541_p5 = por %p540_p4, %p539_p3 }
  0x2d   :  { %v632_v18 = vsel %vm319_vm1, 1, %v566_v3  ;;  %v47_v20 = vadd.s32 48, %v610_v2  ;;  %v48_v21 = vadd.s32 56, %v610_v2  ;;  %v49_v22 = vadd.s32 64, %v610_v2 }
  0x2e   :  { %vm70_vm2 = vcmp.eq.s32.totalorder %v624_v14, %v610_v2  ;;  %vm73_vm3 = vcmp.eq.s32.totalorder %v624_v14, %v42_v9  ;;  %vm71_vm4 = vcmp.eq.s32.totalorder %v628_v15, %v610_v2  ;;  %vm74_vm5 = vcmp.eq.s32.totalorder %v628_v15, %v42_v9  ;;  %p542_p6 = pnand %p541_p5, %p535_p2 }
  0x2f   :  { %vm406_vm6 = vmpackc.low %vm73_vm3, %vm70_vm2  ;;  %vm69_vm7 = vcmp.eq.s32.totalorder %v620_v13, %v610_v2  ;;  %vm72_vm8 = vcmp.eq.s32.totalorder %v620_v13, %v42_v9  ;;  %vm76_vm9 = vcmp.eq.s32.totalorder %v624_v14, %v43_v11  ;;  %vm79_vm10 = vcmp.eq.s32.totalorder %v624_v14, %v44_v12 }
  0x30   :  { %407 = vmatprep.subr.msk.bf16.mxu0 %vm406_vm6, %v567_v19  ;;  %vm438_vm11 = vmpackc.low %vm74_vm5, %vm71_vm4  ;;  %vm77_vm12 = vcmp.eq.s32.totalorder %v628_v15, %v43_v11  ;;  %vm80_vm13 = vcmp.eq.s32.totalorder %v628_v15, %v44_v12  ;;  %vm75_vm15 = vcmp.eq.s32.totalorder %v620_v13, %v43_v11  ;;  %vm78_vm0 = vcmp.eq.s32.totalorder %v620_v13, %v44_v12 }
  0x31   :  { %464 = vmatpush3.bf16.msk.msra.mxu1 %vm438_vm11, %v567_v19  ;;  %vm408_vm14 = vmpackc.low %vm72_vm8, %vm69_vm7  ;;  %vm82_vm2 = vcmp.eq.s32.totalorder %v624_v14, %v45_v16  ;;  %vm85_vm3 = vcmp.eq.s32.totalorder %v624_v14, %v46_v17  ;;  %vm83_vm5 = vcmp.eq.s32.totalorder %v628_v15, %v45_v16  ;;  %vm86_vm6 = vcmp.eq.s32.totalorder %v628_v15, %v46_v17 }
  0x32   :  { %409 = vmatpush1.bf16.msk.msra.mxu0 %vm408_vm14, %v567_v19  ;;  %465 = vmatprep.subr.bf16.mxu1 %v564_v1  ;;  %vm410_vm1 = vmpackc.low %vm79_vm10, %vm76_vm9  ;;  %vm81_vm8 = vcmp.eq.s32.totalorder %v620_v13, %v45_v16  ;;  %vm84_vm11 = vcmp.eq.s32.totalorder %v620_v13, %v46_v17  ;;  %vm88_vm9 = vcmp.eq.s32.totalorder %v624_v14, %v47_v20  ;;  %v50_v23 = vadd.s32 72, %v610_v2 }
  0x33   :  { %411 = vmatprep.subr.msk.bf16.mxu0 %vm410_vm1, %v567_v19  ;;  %vm440_vm4 = vmpackc.low %vm80_vm13, %vm77_vm12  ;;  %vm91_vm10 = vcmp.eq.s32.totalorder %v624_v14, %v48_v21  ;;  %v51_v24 = vadd.s32 80, %v610_v2  ;;  %v52_v25 = vadd.s32 88, %v610_v2  ;;  %v53_v26 = vadd.s32 96, %v610_v2 }
  0x34   :  { %vm412_vm7 = vmpackc.low %vm78_vm0, %vm75_vm15  ;;  %vm89_vm15 = vcmp.eq.s32.totalorder %v628_v15, %v47_v20  ;;  %vm92_vm0 = vcmp.eq.s32.totalorder %v628_v15, %v48_v21  ;;  %v54_v27 = vadd.s32 104, %v610_v2  ;;  %v55_v28 = vadd.s32 112, %v610_v2 }
  0x35   :  { %466 = vmatpush3.bf16.msk.msra.mxu1 %vm440_vm4, %v567_v19  ;;  %vm414_vm14 = vmpackc.low %vm85_vm3, %vm82_vm2  ;;  %vm87_vm2 = vcmp.eq.s32.totalorder %v620_v13, %v47_v20  ;;  %vm90_vm3 = vcmp.eq.s32.totalorder %v620_v13, %v48_v21  ;;  %vm94_vm4 = vcmp.eq.s32.totalorder %v624_v14, %v49_v22  ;;  %v56_v29 = vadd.s32 120, %v610_v2 }
  0x36   :  { %413 = vmatpush1.bf16.msk.msra.mxu0 %vm412_vm7, %v567_v19  ;;  %467 = vmatprep.subr.bf16.mxu1 %v564_v1  ;;  %vm442_vm12 = vmpackc.low %vm86_vm6, %vm83_vm5  ;;  %vm97_vm7 = vcmp.eq.s32.totalorder %v624_v14, %v50_v23  ;;  %v332_v31 = vrot.slane %v632_v18, %v67_v6  ;;  %v324_v32 = vrot.slane %v632_v18, %v59_v4 }
  0x37   :  { %415 = vmatprep.subr.msk.bf16.mxu0 %vm414_vm14, %v567_v19  ;;  %vm416_vm13 = vmpackc.low %vm84_vm11, %vm81_vm8  ;;  %vm95_vm8 = vcmp.eq.s32.totalorder %v628_v15, %v49_v22  ;;  %vm98_vm11 = vcmp.eq.s32.totalorder %v628_v15, %v50_v23  ;;  %v328_v33 = vrot.slane %v632_v18, %v63_v5 }
  0x38   :  { %vm418_vm1 = vmpackc.low %vm91_vm10, %vm88_vm9  ;;  %vm93_vm9 = vcmp.eq.s32.totalorder %v620_v13, %v49_v22  ;;  %vm96_vm10 = vcmp.eq.s32.totalorder %v620_v13, %v50_v23 }
  0x39   :  { %468 = vmatpush3.bf16.msk.msra.mxu1 %vm442_vm12, %v567_v19  ;;  %vm444_vm5 = vmpackc.low %vm92_vm0, %vm89_vm15  ;;  %vm100_vm12 = vcmp.eq.s32.totalorder %v624_v14, %v51_v24 }
  0x3a   :  { %417 = vmatpush1.bf16.msk.msra.mxu0 %vm416_vm13, %v567_v19  ;;  %469 = vmatprep.subr.bf16.mxu1 %v564_v1  ;;  %vm420_vm6 = vmpackc.low %vm90_vm3, %vm87_vm2  ;;  %vm103_vm13 = vcmp.eq.s32.totalorder %v624_v14, %v52_v25  ;;  %vm104_vm2 = vcmp.eq.s32.totalorder %v628_v15, %v52_v25 }
  0x3b   :  { %419 = vmatprep.subr.msk.bf16.mxu0 %vm418_vm1, %v567_v19  ;;  %vm422_vm14 = vmpackc.low %vm97_vm7, %vm94_vm4  ;;  %vm101_vm1 = vcmp.eq.s32.totalorder %v628_v15, %v51_v24  ;;  %vm99_vm4 = vcmp.eq.s32.totalorder %v620_v13, %v51_v24  ;;  %vm102_vm7 = vcmp.eq.s32.totalorder %v620_v13, %v52_v25 }
  0x3c   :  { %vm446_vm15 = vmpackc.low %vm98_vm11, %vm95_vm8 }
  0x3d   :  { %470 = vmatpush3.bf16.msk.msra.mxu1 %vm444_vm5, %v567_v19  ;;  %vm424_vm0 = vmpackc.low %vm96_vm10, %vm93_vm9  ;;  %vm106_vm5 = vcmp.eq.s32.totalorder %v624_v14, %v53_v26  ;;  %vm110_vm9 = vcmp.eq.s32.totalorder %v628_v15, %v54_v27 }
  0x3e   :  { %421 = vmatpush1.bf16.msk.msra.mxu0 %vm420_vm6, %v567_v19  ;;  %471 = vmatprep.subr.bf16.mxu1 %v564_v1  ;;  %vm426_vm3 = vmpackc.low %vm103_vm13, %vm100_vm12  ;;  %vm109_vm6 = vcmp.eq.s32.totalorder %v624_v14, %v54_v27  ;;  %vm105_vm12 = vcmp.eq.s32.totalorder %v620_v13, %v53_v26  ;;  %vm108_vm13 = vcmp.eq.s32.totalorder %v620_v13, %v54_v27 }
  0x3f   :  { %423 = vmatprep.subr.msk.bf16.mxu0 %vm422_vm14, %v567_v19  ;;  %vm448_vm8 = vmpackc.low %vm104_vm2, %vm101_vm1  ;;  %vm107_vm14 = vcmp.eq.s32.totalorder %v628_v15, %v53_v26 }
  0x40   :  { %vm428_vm11 = vmpackc.low %vm102_vm7, %vm99_vm4  ;;  %vm116_vm4 = vcmp.eq.s32.totalorder %v628_v15, %v56_v29 }
  0x41   :  { %472 = vmatpush3.bf16.msk.msra.mxu1 %vm446_vm15, %v567_v19  ;;  %vm430_vm10 = vmpackc.low %vm109_vm6, %vm106_vm5  ;;  %vm112_vm15 = vcmp.eq.s32.totalorder %v624_v14, %v55_v28  ;;  %vm111_vm5 = vcmp.eq.s32.totalorder %v620_v13, %v55_v28  ;;  %vm114_vm6 = vcmp.eq.s32.totalorder %v620_v13, %v56_v29 }
  0x42   :  { %425 = vmatpush1.bf16.msk.msra.mxu0 %vm424_vm0, %v567_v19  ;;  %473 = vmatprep.subr.bf16.mxu1 %v564_v1  ;;  %vm115_vm0 = vcmp.eq.s32.totalorder %v624_v14, %v56_v29  ;;  %vm450_vm1 = vmpackc.low %vm110_vm9, %vm107_vm14  ;;  %vm335_vm14 = vcmp.eq.s32.totalorder %v332_v31, 1  ;;  %vm333_vm9 = vcmp.eq.s32.totalorder %v324_v32, 1 }
  0x43   :  { %427 = vmatprep.subr.msk.bf16.mxu0 %vm426_vm3, %v567_v19  ;;  %vm432_vm2 = vmpackc.low %vm108_vm13, %vm105_vm12  ;;  %vm113_vm3 = vcmp.eq.s32.totalorder %v628_v15, %v55_v28 }
  0x44   :  { %vm434_vm7 = vmpackc.low %vm115_vm0, %vm112_vm15 }
  0x45   :  { %474 = vmatpush3.bf16.msk.msra.mxu1 %vm448_vm8, %v567_v19  ;;  %vm452_vm8 = vmpackc.low %vm116_vm4, %vm113_vm3 }
  0x46   :  { %429 = vmatpush1.bf16.msk.msra.mxu0 %vm428_vm11, %v567_v19  ;;  %475 = vmatprep.subr.bf16.mxu1 %v564_v1  ;;  %vm436_vm11 = vmpackc.low %vm114_vm6, %vm111_vm5 }
  0x47   :  { %431 = vmatprep.subr.msk.bf16.mxu0 %vm430_vm10, %v567_v19  ;;  %vm334_vm10 = vcmp.eq.s32.totalorder %v328_v33, 1 }
  0x49   :  { %476 = vmatpush3.bf16.msk.msra.mxu1 %vm450_vm1, %v567_v19 }
  0x4a   :  { %433 = vmatpush1.bf16.msk.msra.mxu0 %vm432_vm2, %v567_v19  ;;  %477 = vmatprep.subr.bf16.mxu1 %v564_v1 }
  0x4b   :  { %435 = vmatprep.subr.msk.bf16.mxu0 %vm434_vm7, %v567_v19 }
  0x4d   :  { %478 = vmatpush3.bf16.msk.msra.mxu1 %vm452_vm8, %v567_v19 }
  0x4e   :  { %437 = vmatpush1.bf16.msk.msra.mxu0 %vm436_vm11, %v567_v19 }
  0x50   :  { %480 = vmatmul.mubr.bf16.vlgmr.msra.gmra.mrb[0].mxu1 %v237_v30 }
  0x51   :  { %271 = vmatmul.mubr.bf16.vlgmr.msra.gmra.mrb[0].mxu0 %v237_v30 }
 0x123   :  { %v313_v34 = vpop.f32.mrb[0].mxu1 }
 0x124   :  { %v338_v35 = vsel %vm335_vm14, %v313_v34, 0.0  ;;  %v272_v36 = vpop.f32.mrb[0].mxu0  ;;  %v481_v37 = vpop.f32.mrb[1].mxu1 }
 0x125   :  { %341 = vst [vmem:[#allocation7 + $0x10] sm:$0xff] %v338_v35  ;;  %v336_v38 = vsel %vm333_vm9, %v272_v36, 0.0  ;;  %v274_v39 = vpop.f32.mrb[1].mxu0  ;;  %v316_v40 = vpop.f32.mrb[2].mxu1 }
 0x126   :  { %339 = vst [vmem:[#allocation7] sm:$0xff] %v336_v38  ;;  %v337_v41 = vsel %vm334_vm10, %v274_v39, 0.0  ;;  %v276_v42 = vpop.f32.mrb[2].mxu0  ;;  %v482_v43 = vpop.f32.mrb[3].mxu1 }
 0x127   :  { %340 = vst [vmem:[#allocation7 + $0x8] sm:$0xff] %v337_v41  ;;  %v277_v44 = vpop.f32.mrb[3].mxu0 }
 0x128   :  { %545 = shalt.err (!%p542_p6)
}
 0x129   :  { %s546_s9 = scalar_lea.hbm %s751_s2, 384 }
 0x12a   :  { %p547_p7 = scmp.ne.s32.totalorder %s751_s2, %s546_s9  ;;  %p550_p8 = scmp.lt.u32.totalorder %s546_s9, %s751_s2 }
 0x12c   :  { %p552_p9 = pnand %p550_p8, %p547_p7 }
 0x12e   :  { %555 = shalt.err (!%p552_p9)
}
 0x12f   :  { %351 = dma.vmem_to_hbm [thread:$0]  %s349_s5, 384, %s751_s2, [#allocation4]  }
 0x130   :  { %560 = dma.done.wait [#allocation4], 384  }
 0x131   :  { %561 = vsyncadd [#allocation4], 4294966912 }
 0x132   :  { %355 = vsyncpa [#allocation3], 1 }
 0x133   :  { %356 = vsyncpa [#allocation6], 1 }
 0x134   :  { %357 = vsyncpa [#allocation4], 1 }

</bundles_post_ra>
